<compile_context>
chip_gen: v7x
topology: tpu7x:2x2x1
jax: 0.10.0
libtpu: 0.0.40
codegen_flags: <defaults>
</compile_context>

<pallas_src>
import math

import jax
import jax.numpy as jnp
from jax.experimental import pallas as pl
from jax.experimental.pallas import tpu as pltpu

D_MODEL = 64
MAX_LEN = 5000
DROPOUT_P = 0.1  # unused at eval time


def make_pe_table(max_len: int, d_model: int, dtype=jnp.float32) -> jnp.ndarray:
    """Deterministic sinusoidal table, shape (max_len, d_model)."""
    position = jnp.arange(max_len, dtype=jnp.float32)[:, None]            # (L, 1)
    div_term = jnp.exp(
        jnp.arange(0, d_model, 2, dtype=jnp.float32) * (-math.log(10000.0) / d_model)
    )                                                                      # (D/2,)
    ang = position * div_term                                              # (L, D/2)
    pe = jnp.zeros((max_len, d_model), dtype=jnp.float32)
    pe = pe.at[:, 0::2].set(jnp.sin(ang))
    pe = pe.at[:, 1::2].set(jnp.cos(ang))
    return pe.astype(dtype)                                                # (L, D)


def _pe_add_kernel(x_ref, pe_ref, o_ref):
    # x_ref/o_ref: (ts, tn) lane-dense block; pe_ref: (ts, W) with tn % W == 0.
    W = pe_ref.shape[1]
    n_chunks = x_ref.shape[1] // W
    pe = pe_ref[...]
    if n_chunks == 1:
        o_ref[...] = x_ref[...] + pe
    else:
        # Statically unrolled, 128-aligned chunked adds: no materialized tile temp,
        # unmasked vector stores.
        for c in range(n_chunks):
            sl = slice(c * W, (c + 1) * W)
            o_ref[:, sl] = x_ref[:, sl] + pe


def _budget_for_device():
    """(target x-tile bytes, vmem_limit_bytes or None) per TPU generation."""
    kind = ""
    try:
        kind = jax.devices()[0].device_kind.lower()
    except Exception:
        pass
    if "v7" in kind:
        return 6 * 1024 * 1024, 48 * 1024 * 1024   # 64 MiB physical VMEM -> headroom
    if "v6" in kind:
        return 4 * 1024 * 1024, 32 * 1024 * 1024
    if "v5" in kind:
        return 2 * 1024 * 1024, 14 * 1024 * 1024   # 16 MiB default scoped limit
    return 2 * 1024 * 1024, None                   # conservative fallback


def positional_encoding(x: jnp.ndarray, pe_table: jnp.ndarray) -> jnp.ndarray:
    """x: (S, B, D).  Returns x + pe[:S] broadcast over batch (dropout = identity)."""
    S, B, D = x.shape
    L, Dp = pe_table.shape
    assert Dp == D, f"pe table d_model {Dp} != input d_model {D}"
    assert S <= L, f"sequence length {S} exceeds pe table max_len {L}"
    assert pe_table.dtype == x.dtype

    itemsize = jnp.dtype(x.dtype).itemsize
    sub = max(8, 32 // itemsize)                 # sublane quantum for this dtype
    target_bytes, vmem_limit = _budget_for_device()

    # ---- pe lane-chunk width W: multiple of 128 (and of D), dividing B*D ----------
    W = math.lcm(D, 128)
    if (B * D) % W != 0:
        # Fallback (e.g. odd B with D=64): tile pe to the full row width.  Correct,
        # just more pe HBM traffic / possibly masked tail stores.
        W = B * D
    reps = W // D
    pe_rows = pe_table[:S]
    pe_w = pe_rows if reps == 1 else jnp.tile(pe_rows, (1, reps))   # (S, W)

    # Lane-dense view of x: (S, B*D).  B and D are adjacent/contiguous, so free.
    x2 = x.reshape(S, B * D)
    row_bytes = B * D * itemsize

    # ---- tile sizing: (ts, tn) with ts multiple of `sub` (or == S), tn multiple of W
    if row_bytes <= target_bytes:
        tn = B * D
        ts = max(sub, (target_bytes // max(1, row_bytes)) // sub * sub)
    else:
        # Huge B*D: tile the lane axis too so a block stays within budget.
        ts = sub
        tn = max(W, (target_bytes // max(1, ts * itemsize)) // W * W)
        tn = min(tn, B * D)
    if ts >= S:
        ts = S                                    # full-dim block is always legal
    # v7x megacore: make sure there are >=2 parallel grid steps when feasible.
    if pl.cdiv(S, ts) < 2 and pl.cdiv(B * D, tn) < 2 and S >= 2 * sub:
        half = pl.cdiv(S, 2)
        ts = max(sub, pl.cdiv(half, sub) * sub)

    grid = (pl.cdiv(S, ts), pl.cdiv(B * D, tn))

    compiler_kwargs = dict(dimension_semantics=("parallel", "parallel"))
    if vmem_limit is not None:
        compiler_kwargs["vmem_limit_bytes"] = vmem_limit

    cost = pl.CostEstimate(
        flops=int(S * B * D),
        transcendentals=0,
        bytes_accessed=int((2 * S * B * D + S * W) * itemsize),
    )

    out2 = pl.pallas_call(
        _pe_add_kernel,
        out_shape=jax.ShapeDtypeStruct((S, B * D), x.dtype),
        grid=grid,
        in_specs=[
            pl.BlockSpec((ts, tn), lambda i, j: (i, j)),   # x tile
            pl.BlockSpec((ts, W), lambda i, j: (i, 0)),    # pe rows (shared across lane chunks)
        ],
        out_specs=pl.BlockSpec((ts, tn), lambda i, j: (i, j)),
        input_output_aliases={0: 0},                        # out aliases x (x += pe)
        compiler_params=pltpu.CompilerParams(**compiler_kwargs),
        cost_estimate=cost,
    )(x2, pe_w)

    return out2.reshape(S, B, D)


if __name__ == "__main__":
    # Small deterministic example: seq=8, batch=2, d_model=64.
    key = jax.random.PRNGKey(0)
    S, B, D = 8, 2, D_MODEL
    x = jax.random.normal(key, (S, B, D), dtype=jnp.float32)

    pe_table = make_pe_table(MAX_LEN, D, dtype=x.dtype)

    out = positional_encoding(x, pe_table)
    out = jax.block_until_ready(out)

    # Reference (pure JAX) check of the forward semantics (eval mode).
    ref = x + pe_table[:S][:, None, :]
    assert out.shape == (S, B, D)
    assert jnp.allclose(out, ref, atol=1e-6, rtol=1e-6)

    print("KERNEL_OK")
</pallas_src>

<mosaic_0001>
module attributes {stable_mosaic.version = 11 : i64} {
  func.func @_pe_add_kernel(%arg0: i32, %arg1: i32, %arg2: memref<8x128xf32, #tpu.memory_space<vmem>>, %arg3: memref<8x128xf32, #tpu.memory_space<vmem>>, %arg4: memref<8x128xf32, #tpu.memory_space<vmem>>) attributes {dimension_semantics = [#tpu.dimension_semantics<parallel>, #tpu.dimension_semantics<parallel>], iteration_bounds = array<i64: 1, 1>, scalar_prefetch = 0 : i64, scratch_operands = 0 : i64, tpu.core_type = #tpu.core_type<tc>, window_params = [{transform_indices = @transform_0, window_bounds = array<i64: 8, 128>}, {transform_indices = @transform_1, window_bounds = array<i64: 8, 128>}, {transform_indices = @transform_2, window_bounds = array<i64: 8, 128>}]} {
    %c0 = arith.constant 0 : index
    %c0_0 = arith.constant 0 : index
    %0 = vector.load %arg3[%c0, %c0_0] : memref<8x128xf32, #tpu.memory_space<vmem>>, vector<8x128xf32>
    %c0_1 = arith.constant 0 : index
    %c0_2 = arith.constant 0 : index
    %1 = vector.load %arg2[%c0_1, %c0_2] : memref<8x128xf32, #tpu.memory_space<vmem>>, vector<8x128xf32>
    %2 = arith.addf %1, %0 : vector<8x128xf32>
    %c0_3 = arith.constant 0 : index
    %c0_4 = arith.constant 0 : index
    %3 = vector.load %arg4[%c0_3, %c0_4] : memref<8x128xf32, #tpu.memory_space<vmem>>, vector<8x128xf32>
    tpu.vector_store %arg4[%c0_3, %c0_4], %2 {strides = array<i32>} : memref<8x128xf32, #tpu.memory_space<vmem>>, vector<8x128xf32>,
    return
  }
  func.func @transform_0(%arg0: i32, %arg1: i32) -> (i32, i32) {
    %c0_i32 = arith.constant 0 : i32
    return %arg0, %arg1 : i32, i32
  }
  func.func @transform_1(%arg0: i32, %arg1: i32) -> (i32, i32) {
    %c0_i32 = arith.constant 0 : i32
    %c0_i32_0 = arith.constant 0 : i32
    return %arg0, %c0_i32 : i32, i32
  }
  func.func @transform_2(%arg0: i32, %arg1: i32) -> (i32, i32) {
    %c0_i32 = arith.constant 0 : i32
    return %arg0, %arg1 : i32, i32
  }
}

</mosaic_0001>

<bundles_post_ra>
// kernel: tpu_custom_call.1
= control target key start
LH: loop header
LB: loop body
LE: loop exit
PB: predicated region body
PF: predicated region fallthrough
CT: control target
= control target key end

     0   :  { %7 = vsyncpa [#allocation3], 0  ;;  %s137_s0 = inlined_call_operand.hbm [shape: f32[8,128], index: 0, kind: input, shape index: {}, may-alias: {0,2}]   ;;  %s138_s1 = inlined_call_operand.vmem [shape: f32[8,128], index: 1, kind: input, shape index: {}]   ;;  %s139_s2 = inlined_call_operand.hbm [shape: f32[8,128], index: 2, kind: output, shape index: {}, may-alias: {0,2}]  }
   0x1   :  { %8 = vsyncpa [#allocation4], 0  ;;  %s93_s9 = smov [#allocation2]   ;;  %s45_s13 = scalar_lea.hbm %s137_s0, 128 }
   0x2   :  { %s15_s10 = sshll.u32 %s93_s9, 4  ;;  %p46_p0 = scmp.ne.s32.totalorder %s137_s0, %s45_s13  ;;  %s16_s10 = int_to_ptr.vmem [resolvable:$true] %s15_s10 }
   0x3   :  { %p49_p1 = scmp.lt.u32.totalorder %s45_s13, %s137_s0 }
   0x5   :  { %p51_p2 = pnand %p49_p1, %p46_p0 }
   0x7   :  { %54 = shalt.err (!%p51_p2)
}
   0x8   :  { %s55_s18 = scalar_lea.vmem %s16_s10, 128  ;;  %p60_p4 = scmp.lt.s32.totalorder %s16_s10, %s16_s10 }
   0x9   :  { %p56_p3 = scmp.ne.s32.totalorder %s16_s10, %s55_s18  ;;  %p61_p5 = scmp.lt.s32.totalorder %s55_s18, %s55_s18 }
   0xb   :  { %p62_p6 = por %p61_p5, %p60_p4 }
   0xd   :  { %p63_p7 = pnand %p62_p6, %p56_p3 }
   0xf   :  { %66 = shalt.err (!%p63_p7)
}
  0x10   :  { %18 = dma.hbm_to_vmem [thread:$0]  %s137_s0, 128, %s16_s10, [#allocation3]  }
  0x11   :  { %89 = dma.done.wait [#allocation3], 128  }
  0x12   :  { %90 = vsyncadd [#allocation3], 4294967168  ;;  %s94_s21 = smov [#allocation5]   ;;  %v24_v0 = vld [vmem:[%s138_s1] sm:$0xff] }
  0x13   :  { %s34_s22 = sshll.u32 %s94_s21, 4  ;;  %v25_v1 = vld [vmem:[#allocation2] sm:$0xff]  ;;  %s35_s22 = int_to_ptr.vmem [resolvable:$true] %s34_s22 }
  0x14   :  { %v26_v2 = vadd.f32 %v25_v1, %v24_v0  ;;  %s67_s25 = scalar_lea.vmem %s35_s22, 128  ;;  %p72_p9 = scmp.lt.s32.totalorder %s35_s22, %s35_s22 }
  0x15   :  { %p68_p8 = scmp.ne.s32.totalorder %s35_s22, %s67_s25  ;;  %p73_p10 = scmp.lt.s32.totalorder %s67_s25, %s67_s25 }
  0x16   :  { %27 = vst [vmem:[#allocation5] sm:$0xff] %v26_v2 }
  0x17   :  { %p74_p11 = por %p73_p10, %p72_p9 }
  0x19   :  { %p75_p12 = pnand %p74_p11, %p68_p8 }
  0x1b   :  { %78 = shalt.err (!%p75_p12)
}
  0x1c   :  { %s79_s27 = scalar_lea.hbm %s139_s2, 128 }
  0x1d   :  { %p80_p13 = scmp.ne.s32.totalorder %s139_s2, %s79_s27  ;;  %p83_p0 = scmp.lt.u32.totalorder %s79_s27, %s139_s2 }
  0x1f   :  { %p85_p1 = pnand %p83_p0, %p80_p13 }
  0x21   :  { %88 = shalt.err (!%p85_p1)
}
  0x22   :  { %37 = dma.vmem_to_hbm [thread:$0]  %s35_s22, 128, %s139_s2, [#allocation4]  }
  0x23   :  { %91 = dma.done.wait [#allocation4], 128  }
  0x24   :  { %92 = vsyncadd [#allocation4], 4294967168 }
  0x25   :  { %41 = vsyncpa [#allocation3], 1 }
  0x26   :  { %42 = vsyncpa [#allocation4], 1 }

</bundles_post_ra>
